<compile_context>
chip_gen: v7x
topology: tpu7x:2x2x1
jax: 0.10.0
libtpu: 0.0.40
codegen_flags: <defaults>
</compile_context>

<pallas_src>
import jax
import jax.numpy as jnp
from jax.experimental import pallas as pl
from jax.experimental.pallas import tpu as pltpu

LOG_STD_MAX = 2.0
LOG_STD_MIN = -5.0
# LOG_STD_MIN + 0.5*(MAX-MIN)*(tanh(s)+1)  ==  _A*tanh(s) + _B
_A = 0.5 * (LOG_STD_MAX - LOG_STD_MIN)   # 3.5
_B = LOG_STD_MIN + _A                    # -1.5

HEAD_WIDTH = 128   # single lane group holding BOTH heads (lane-dense store)
MEAN_OFF = 0       # fc_mean    lives in cols [0,        act_dim)
LOGSTD_OFF = 64    # fc_logstd  lives in cols [64,  64 + act_dim)


def actor_kernel(x_ref, w1_ref, b1_ref, w2_ref, b2_ref, wh_ref, bh_ref, out_ref):
    cdt = w1_ref.dtype  # MXU input dtype (bf16 by default, f32 if disabled)
    x = x_ref[...].astype(cdt)

    # trunk layer 1 + ReLU (bias / activation math stays f32)
    h = jnp.dot(x, w1_ref[...], preferred_element_type=jnp.float32) + b1_ref[...]
    h = jnp.maximum(h, 0.0)

    # trunk layer 2 (has_act_final=False)
    h = jnp.dot(h.astype(cdt), w2_ref[...],
                preferred_element_type=jnp.float32) + b2_ref[...]

    # fused heads: one (hidden, 128) matmul; mean in [0:64), logstd in [64:128)
    heads = jnp.dot(h.astype(cdt), wh_ref[...],
                    preferred_element_type=jnp.float32) + bh_ref[...]

    # single select-and-store (no concatenate, no sub-128-lane slicing):
    # mean columns pass through, logstd columns get the folded tanh affine.
    col = jax.lax.broadcasted_iota(jnp.int32, heads.shape, dimension=1)
    log_std = _A * jnp.tanh(heads) + _B
    out_ref[...] = jnp.where(col < LOGSTD_OFF, heads, log_std).astype(out_ref.dtype)


def prepare_actor_params(params, use_bf16=True):
    """One-time param prep: pack both heads into a single 128-lane group and
    cast matmul weights to bf16 (halves weight DMA; f32 accumulation in-kernel)."""
    w1, b1, w2, b2, wm, bm, ws, bs = params
    hidden = w2.shape[1]
    act_dim = wm.shape[1]
    assert act_dim <= LOGSTD_OFF, "packed-head layout requires act_dim <= 64"

    wh = jnp.zeros((hidden, HEAD_WIDTH), jnp.float32)
    wh = wh.at[:, MEAN_OFF:MEAN_OFF + act_dim].set(wm)
    wh = wh.at[:, LOGSTD_OFF:LOGSTD_OFF + act_dim].set(ws)
    bh = jnp.zeros((1, HEAD_WIDTH), jnp.float32)
    bh = bh.at[:, MEAN_OFF:MEAN_OFF + act_dim].set(bm)
    bh = bh.at[:, LOGSTD_OFF:LOGSTD_OFF + act_dim].set(bs)

    cdt = jnp.bfloat16 if use_bf16 else jnp.float32
    return (w1.astype(cdt), b1.astype(jnp.float32),
            w2.astype(cdt), b2.astype(jnp.float32),
            wh.astype(cdt), bh.astype(jnp.float32))


def _round_up(n, m):
    return -(-n // m) * m


def _pick_tm(B, tm=None):
    """Pick a batch tile.  Prefer a tile from {512, 256, 128} that divides B
    (no wrapper-side pad of x); small batches get a single sublane-aligned tile."""
    if tm is not None:
        return min(tm, max(8, _round_up(B, 8)))
    for cand in (512, 256, 128):
        if B % cand == 0:
            return cand
    b8 = _round_up(B, 8)
    if b8 <= 512:
        return b8          # single grid step, at most 7 padded rows
    return 256             # fall back: pad up to a multiple of 256


def actor_forward(x, prepared, act_dim, *, tm=None, out_dtype=jnp.float32):
    """x: (B, obs_dim) f32.  prepared: output of prepare_actor_params.
    Returns (mean, log_std), each (B, act_dim) in out_dtype."""
    w1, b1, w2, b2, wh, bh = prepared
    B, obs_dim = x.shape
    hidden = w1.shape[1]

    tm = _pick_tm(B, tm)
    b_pad = _round_up(B, tm)
    if b_pad != B:
        x = jnp.pad(x, ((0, b_pad - B), (0, 0)))

    const = lambda i: (0, 0)  # weights: resident in VMEM across grid steps

    out = pl.pallas_call(
        actor_kernel,
        out_shape=jax.ShapeDtypeStruct((b_pad, HEAD_WIDTH), out_dtype),
        grid=(b_pad // tm,),
        in_specs=[
            pl.BlockSpec((tm, obs_dim), lambda i: (i, 0)),   # x (batch-blocked)
            pl.BlockSpec((obs_dim, hidden), const),          # w1
            pl.BlockSpec((1, hidden), const),                # b1
            pl.BlockSpec((hidden, hidden), const),           # w2
            pl.BlockSpec((1, hidden), const),                # b2
            pl.BlockSpec((hidden, HEAD_WIDTH), const),       # fused heads W
            pl.BlockSpec((1, HEAD_WIDTH), const),            # fused heads b
        ],
        out_specs=pl.BlockSpec((tm, HEAD_WIDTH), lambda i: (i, 0)),
        compiler_params=pltpu.CompilerParams(
            dimension_semantics=("parallel",)),
    )(x, w1, b1, w2, b2, wh, bh)

    mean = out[:B, MEAN_OFF:MEAN_OFF + act_dim]
    log_std = out[:B, LOGSTD_OFF:LOGSTD_OFF + act_dim]
    return mean, log_std


def init_linear(key, fan_in, fan_out):
    """Matches PyTorch nn.Linear's U(-1/sqrt(fan_in), +1/sqrt(fan_in)) init.
    Weight stored as (in, out); bias as (1, out)."""
    kw, kb = jax.random.split(key)
    bound = 1.0 / jnp.sqrt(jnp.float32(fan_in))
    w = jax.random.uniform(kw, (fan_in, fan_out), jnp.float32, -bound, bound)
    b = jax.random.uniform(kb, (1, fan_out), jnp.float32, -bound, bound)
    return w, b


def reference_forward(x, params):
    w1, b1, w2, b2, wm, bm, ws, bs = params
    h = jnp.maximum(x @ w1 + b1, 0.0)
    h = h @ w2 + b2
    mean = h @ wm + bm
    log_std = jnp.tanh(h @ ws + bs)
    log_std = LOG_STD_MIN + 0.5 * (LOG_STD_MAX - LOG_STD_MIN) * (log_std + 1.0)
    return mean, log_std


if __name__ == "__main__":
    # Small deterministic problem: batch=8, obs_dim=16, hidden=256, act_dim=4
    batch, obs_dim, hidden, act_dim = 8, 16, 256, 4

    root = jax.random.PRNGKey(0)
    kx, k1, k2, km, ks, kx2, kx3 = jax.random.split(root, 7)

    x = jax.random.normal(kx, (batch, obs_dim), jnp.float32)

    w1, b1 = init_linear(k1, obs_dim, hidden)   # trunk layer 1
    w2, b2 = init_linear(k2, hidden, hidden)    # trunk layer 2
    wm, bm = init_linear(km, hidden, act_dim)   # fc_mean
    ws, bs = init_linear(ks, hidden, act_dim)   # fc_logstd
    params = (w1, b1, w2, b2, wm, bm, ws, bs)

    ref_mean, ref_log_std = reference_forward(x, params)

    # 1) exact-path check (f32 MXU inputs, f32 output) -> tight tolerance
    prep_f32 = prepare_actor_params(params, use_bf16=False)
    mean, log_std = jax.block_until_ready(actor_forward(x, prep_f32, act_dim))
    assert mean.shape == (batch, act_dim) and log_std.shape == (batch, act_dim)
    assert jnp.allclose(mean, ref_mean, atol=1e-4, rtol=1e-4)
    assert jnp.allclose(log_std, ref_log_std, atol=1e-4, rtol=1e-4)

    # 2) fast path (bf16 MXU inputs, f32 accumulation, f32 output)
    prep_bf16 = prepare_actor_params(params, use_bf16=True)
    mean_b, log_std_b = jax.block_until_ready(actor_forward(x, prep_bf16, act_dim))
    assert jnp.allclose(mean_b, ref_mean, atol=2e-2, rtol=2e-2)
    assert jnp.allclose(log_std_b, ref_log_std, atol=2e-2, rtol=2e-2)

    # 3) bf16 output path (halved output writeback) -> slightly looser tolerance
    mean_h, log_std_h = jax.block_until_ready(
        actor_forward(x, prep_bf16, act_dim, out_dtype=jnp.bfloat16))
    assert mean_h.dtype == jnp.bfloat16
    assert jnp.allclose(mean_h.astype(jnp.float32), ref_mean, atol=3e-2, rtol=3e-2)
    assert jnp.allclose(log_std_h.astype(jnp.float32), ref_log_std, atol=3e-2, rtol=3e-2)

    # 4) large batch exercising multi-step grid with tm=512 (no wrapper pad)
    xb = jax.random.normal(kx2, (1024, obs_dim), jnp.float32)
    mean_g, log_std_g = jax.block_until_ready(actor_forward(xb, prep_bf16, act_dim))
    ref_mg, ref_lg = reference_forward(xb, params)
    assert mean_g.shape == (1024, act_dim) and log_std_g.shape == (1024, act_dim)
    assert jnp.allclose(mean_g, ref_mg, atol=2e-2, rtol=2e-2)
    assert jnp.allclose(log_std_g, ref_lg, atol=2e-2, rtol=2e-2)

    # 5) awkward batch (not a multiple of 128) -> single sublane-aligned tile
    xc = jax.random.normal(kx3, (200, obs_dim), jnp.float32)
    mean_c, log_std_c = jax.block_until_ready(actor_forward(xc, prep_bf16, act_dim))
    ref_mc, ref_lc = reference_forward(xc, params)
    assert mean_c.shape == (200, act_dim) and log_std_c.shape == (200, act_dim)
    assert jnp.allclose(mean_c, ref_mc, atol=2e-2, rtol=2e-2)
    assert jnp.allclose(log_std_c, ref_lc, atol=2e-2, rtol=2e-2)

    # TODO(synk): get_action's rsample / Normal log_prob (stochastic sampling)
    # is host-side distribution logic, not part of forward(); not kernelized.

    print("KERNEL_OK")
</pallas_src>

<mosaic_0001>
module attributes {stable_mosaic.version = 11 : i64} {
  func.func @actor_kernel(%arg0: i32, %arg1: memref<8x16xf32, #tpu.memory_space<vmem>>, %arg2: memref<16x256xf32, #tpu.memory_space<vmem>>, %arg3: memref<1x256xf32, #tpu.memory_space<vmem>>, %arg4: memref<256x256xf32, #tpu.memory_space<vmem>>, %arg5: memref<1x256xf32, #tpu.memory_space<vmem>>, %arg6: memref<256x128xf32, #tpu.memory_space<vmem>>, %arg7: memref<1x128xf32, #tpu.memory_space<vmem>>, %arg8: memref<8x128xf32, #tpu.memory_space<vmem>>) attributes {dimension_semantics = [#tpu.dimension_semantics<parallel>], iteration_bounds = array<i64: 1>, scalar_prefetch = 0 : i64, scratch_operands = 0 : i64, tpu.core_type = #tpu.core_type<tc>, window_params = [{transform_indices = @transform_0, window_bounds = array<i64: 8, 16>}, {pipeline_mode = #tpu.pipeline_mode<synchronous>, transform_indices = @transform_1, window_bounds = array<i64: 16, 256>}, {pipeline_mode = #tpu.pipeline_mode<synchronous>, transform_indices = @transform_2, window_bounds = array<i64: 1, 256>}, {pipeline_mode = #tpu.pipeline_mode<synchronous>, transform_indices = @transform_3, window_bounds = array<i64: 256, 256>}, {pipeline_mode = #tpu.pipeline_mode<synchronous>, transform_indices = @transform_4, window_bounds = array<i64: 1, 256>}, {pipeline_mode = #tpu.pipeline_mode<synchronous>, transform_indices = @transform_5, window_bounds = array<i64: 256, 128>}, {pipeline_mode = #tpu.pipeline_mode<synchronous>, transform_indices = @transform_6, window_bounds = array<i64: 1, 128>}, {transform_indices = @transform_7, window_bounds = array<i64: 8, 128>}]} {
    %c0 = arith.constant 0 : index
    %c0_0 = arith.constant 0 : index
    %0 = vector.load %arg1[%c0, %c0_0] : memref<8x16xf32, #tpu.memory_space<vmem>>, vector<8x16xf32>
    %c0_1 = arith.constant 0 : index
    %c0_2 = arith.constant 0 : index
    %1 = vector.load %arg2[%c0_1, %c0_2] : memref<16x256xf32, #tpu.memory_space<vmem>>, vector<16x256xf32>
    %cst = arith.constant dense<0.000000e+00> : vector<8x256xf32>
    %2 = tpu.matmul %0, %1, %cst {dimension_numbers = #tpu.dot_dimension_numbers<[1], [0], [0], [1], [0, 0, 1, 1], [], []>} : vector<8x16xf32>, vector<16x256xf32>, vector<8x256xf32> -> vector<8x256xf32>
    %c0_3 = arith.constant 0 : index
    %c0_4 = arith.constant 0 : index
    %3 = vector.load %arg3[%c0_3, %c0_4] : memref<1x256xf32, #tpu.memory_space<vmem>>, vector<1x256xf32>
    %4 = vector.broadcast %3 : vector<1x256xf32> to vector<8x256xf32>
    %5 = arith.addf %2, %4 : vector<8x256xf32>
    %cst_5 = arith.constant 0.000000e+00 : f32
    %6 = vector.broadcast %cst_5 : f32 to vector<8x256xf32>
    %7 = arith.maximumf %5, %6 : vector<8x256xf32>
    %c0_6 = arith.constant 0 : index
    %c0_7 = arith.constant 0 : index
    %8 = vector.load %arg4[%c0_6, %c0_7] : memref<256x256xf32, #tpu.memory_space<vmem>>, vector<256x256xf32>
    %cst_8 = arith.constant dense<0.000000e+00> : vector<8x256xf32>
    %9 = tpu.matmul %7, %8, %cst_8 {dimension_numbers = #tpu.dot_dimension_numbers<[1], [0], [0], [1], [0, 0, 1, 1], [], []>} : vector<8x256xf32>, vector<256x256xf32>, vector<8x256xf32> -> vector<8x256xf32>
    %c0_9 = arith.constant 0 : index
    %c0_10 = arith.constant 0 : index
    %10 = vector.load %arg5[%c0_9, %c0_10] : memref<1x256xf32, #tpu.memory_space<vmem>>, vector<1x256xf32>
    %11 = vector.broadcast %10 : vector<1x256xf32> to vector<8x256xf32>
    %12 = arith.addf %9, %11 : vector<8x256xf32>
    %c0_11 = arith.constant 0 : index
    %c0_12 = arith.constant 0 : index
    %13 = vector.load %arg6[%c0_11, %c0_12] : memref<256x128xf32, #tpu.memory_space<vmem>>, vector<256x128xf32>
    %cst_13 = arith.constant dense<0.000000e+00> : vector<8x128xf32>
    %14 = tpu.matmul %12, %13, %cst_13 {dimension_numbers = #tpu.dot_dimension_numbers<[1], [0], [0], [1], [0, 0, 1, 1], [], []>} : vector<8x256xf32>, vector<256x128xf32>, vector<8x128xf32> -> vector<8x128xf32>
    %c0_14 = arith.constant 0 : index
    %c0_15 = arith.constant 0 : index
    %15 = vector.load %arg7[%c0_14, %c0_15] : memref<1x128xf32, #tpu.memory_space<vmem>>, vector<1x128xf32>
    %16 = vector.broadcast %15 : vector<1x128xf32> to vector<8x128xf32>
    %17 = arith.addf %14, %16 : vector<8x128xf32>
    %18 = tpu.iota {dimensions = array<i32: 1>} : vector<8x128xi32>
    %19 = math.tanh %17 : vector<8x128xf32>
    %cst_16 = arith.constant 3.500000e+00 : f32
    %20 = vector.broadcast %cst_16 : f32 to vector<8x128xf32>
    %21 = arith.mulf %20, %19 : vector<8x128xf32>
    %cst_17 = arith.constant -1.500000e+00 : f32
    %22 = vector.broadcast %cst_17 : f32 to vector<8x128xf32>
    %23 = arith.addf %21, %22 : vector<8x128xf32>
    %c64_i32 = arith.constant 64 : i32
    %24 = vector.broadcast %c64_i32 : i32 to vector<8x128xi32>
    %25 = arith.cmpi slt, %18, %24 : vector<8x128xi32>
    %26 = arith.select %25, %17, %23 : vector<8x128xi1>, vector<8x128xf32>
    %c0_18 = arith.constant 0 : index
    %c0_19 = arith.constant 0 : index
    %27 = vector.load %arg8[%c0_18, %c0_19] : memref<8x128xf32, #tpu.memory_space<vmem>>, vector<8x128xf32>
    tpu.vector_store %arg8[%c0_18, %c0_19], %26 {strides = array<i32>} : memref<8x128xf32, #tpu.memory_space<vmem>>, vector<8x128xf32>,
    return
  }
  func.func @transform_0(%arg0: i32) -> (i32, i32) {
    %c0_i32 = arith.constant 0 : i32
    %c0_i32_0 = arith.constant 0 : i32
    return %arg0, %c0_i32 : i32, i32
  }
  func.func @transform_1(%arg0: i32) -> (i32, i32) {
    %c0_i32 = arith.constant 0 : i32
    %c0_i32_0 = arith.constant 0 : i32
    %c0_i32_1 = arith.constant 0 : i32
    return %c0_i32, %c0_i32_0 : i32, i32
  }
  func.func @transform_2(%arg0: i32) -> (i32, i32) {
    %c0_i32 = arith.constant 0 : i32
    %c0_i32_0 = arith.constant 0 : i32
    %c0_i32_1 = arith.constant 0 : i32
    return %c0_i32, %c0_i32_0 : i32, i32
  }
  func.func @transform_3(%arg0: i32) -> (i32, i32) {
    %c0_i32 = arith.constant 0 : i32
    %c0_i32_0 = arith.constant 0 : i32
    %c0_i32_1 = arith.constant 0 : i32
    return %c0_i32, %c0_i32_0 : i32, i32
  }
  func.func @transform_4(%arg0: i32) -> (i32, i32) {
    %c0_i32 = arith.constant 0 : i32
    %c0_i32_0 = arith.constant 0 : i32
    %c0_i32_1 = arith.constant 0 : i32
    return %c0_i32, %c0_i32_0 : i32, i32
  }
  func.func @transform_5(%arg0: i32) -> (i32, i32) {
    %c0_i32 = arith.constant 0 : i32
    %c0_i32_0 = arith.constant 0 : i32
    %c0_i32_1 = arith.constant 0 : i32
    return %c0_i32, %c0_i32_0 : i32, i32
  }
  func.func @transform_6(%arg0: i32) -> (i32, i32) {
    %c0_i32 = arith.constant 0 : i32
    %c0_i32_0 = arith.constant 0 : i32
    %c0_i32_1 = arith.constant 0 : i32
    return %c0_i32, %c0_i32_0 : i32, i32
  }
  func.func @transform_7(%arg0: i32) -> (i32, i32) {
    %c0_i32 = arith.constant 0 : i32
    %c0_i32_0 = arith.constant 0 : i32
    return %arg0, %c0_i32 : i32, i32
  }
}

</mosaic_0001>

<bundles_post_ra>
// kernel: tpu_custom_call.1
= control target key start
LH: loop header
LB: loop body
LE: loop exit
PB: predicated region body
PF: predicated region fallthrough
CT: control target
= control target key end

     0   :  { %12 = vsyncpa [#allocation3], 0  ;;  %s847_s0 = inlined_call_operand.hbm [shape: f32[8,16], index: 0, kind: input, shape index: {}]   ;;  %s848_s1 = inlined_call_operand.hbm [shape: f32[16,256], index: 1, kind: input, shape index: {}]   ;;  %s849_s2 = inlined_call_operand.vmem [shape: f32[1,256], index: 2, kind: input, shape index: {}]   ;;  %s850_s3 = inlined_call_operand.hbm [shape: f32[256,256], index: 3, kind: input, shape index: {}]   ;;  %s851_s4 = inlined_call_operand.vmem [shape: f32[1,256], index: 4, kind: input, shape index: {}]   ;;  %s852_s5 = inlined_call_operand.hbm [shape: f32[256,128], index: 5, kind: input, shape index: {}]   ;;  %s853_s6 = inlined_call_operand.vmem [shape: f32[1,128], index: 6, kind: input, shape index: {}]   ;;  %s854_s7 = inlined_call_operand.hbm [shape: f32[8,128], index: 7, kind: output, shape index: {}]  }
   0x1   :  { %13 = vsyncpa [#allocation6], 0 }
   0x2   :  { %14 = vsyncpa [#allocation9], 0 }
   0x3   :  { %15 = vsyncpa [#allocation4], 0  ;;  %s722_s24 = smov [#allocation5]   ;;  %s604_s28 = scalar_lea.hbm %s848_s1, 512 }
   0x4   :  { %s31_s25 = sshll.u32 %s722_s24, 4  ;;  %p605_p0 = scmp.ne.s32.totalorder %s848_s1, %s604_s28  ;;  %s32_s25 = int_to_ptr.vmem [resolvable:$true] %s31_s25 }
   0x5   :  { %p608_p1 = scmp.lt.u32.totalorder %s604_s28, %s848_s1 }
   0x7   :  { %p610_p2 = pnand %p608_p1, %p605_p0 }
   0x9   :  { %613 = shalt.err (!%p610_p2)
}
   0xa   :  { %s614_s10 = scalar_lea.vmem %s32_s25, 512  ;;  %p619_p4 = scmp.lt.s32.totalorder %s32_s25, %s32_s25 }
   0xb   :  { %p615_p3 = scmp.ne.s32.totalorder %s32_s25, %s614_s10  ;;  %p620_p5 = scmp.lt.s32.totalorder %s614_s10, %s614_s10 }
   0xd   :  { %p621_p6 = por %p620_p5, %p619_p4 }
   0xf   :  { %p622_p7 = pnand %p621_p6, %p615_p3 }
  0x11   :  { %625 = shalt.err (!%p622_p7)
}
  0x12   :  { %s723_s11 = smov 256   ;;  %s724_s12 = smov 16  }
  0x13   :  { %37 = dma.hbm_to_vmem [thread:$0]  %s848_s1, 512, %s32_s25, [#allocation6], %s723_s11, %s723_s11, %s724_s12  }
  0x14   :  { %s725_s15 = smov [#allocation2]   ;;  %s726_s17 = smov [#allocation7]  }
  0x15   :  { %s22_s16 = sshll.u32 %s725_s15, 4  ;;  %s45_s18 = sshll.u32 %s726_s17, 4  ;;  %s23_s16 = int_to_ptr.vmem [resolvable:$true] %s22_s16  ;;  %s46_s18 = int_to_ptr.vmem [resolvable:$true] %s45_s18 }
  0x16   :  { %s626_s21 = scalar_lea.hbm %s847_s0, 128 }
  0x17   :  { %p627_p8 = scmp.ne.s32.totalorder %s847_s0, %s626_s21  ;;  %p630_p9 = scmp.lt.u32.totalorder %s626_s21, %s847_s0 }
  0x19   :  { %p632_p10 = pnand %p630_p9, %p627_p8 }
  0x1b   :  { %635 = shalt.err (!%p632_p10)
}
  0x1c   :  { %s636_s1 = scalar_lea.vmem %s23_s16, 128  ;;  %p641_p12 = scmp.lt.s32.totalorder %s23_s16, %s23_s16 }
  0x1d   :  { %p637_p11 = scmp.ne.s32.totalorder %s23_s16, %s636_s1  ;;  %p642_p13 = scmp.lt.s32.totalorder %s636_s1, %s636_s1 }
  0x1f   :  { %p643_p0 = por %p642_p13, %p641_p12 }
  0x21   :  { %p644_p1 = pnand %p643_p0, %p637_p11 }
  0x23   :  { %647 = shalt.err (!%p644_p1)
}
  0x24   :  { %25 = dma.hbm_to_vmem [thread:$0]  %s847_s0, 128, %s23_s16, [#allocation3]  }
  0x25   :  { %s648_s30 = scalar_lea.hbm %s850_s3, 8192 }
  0x26   :  { %p649_p2 = scmp.ne.s32.totalorder %s850_s3, %s648_s30  ;;  %p652_p3 = scmp.lt.u32.totalorder %s648_s30, %s850_s3 }
  0x28   :  { %p654_p4 = pnand %p652_p3, %p649_p2 }
  0x2a   :  { %657 = shalt.err (!%p654_p4)
}
  0x2b   :  { %s658_s14 = scalar_lea.vmem %s46_s18, 8192  ;;  %p663_p6 = scmp.lt.s32.totalorder %s46_s18, %s46_s18 }
  0x2c   :  { %p659_p5 = scmp.ne.s32.totalorder %s46_s18, %s658_s14  ;;  %p664_p7 = scmp.lt.s32.totalorder %s658_s14, %s658_s14 }
  0x2e   :  { %p665_p8 = por %p664_p7, %p663_p6 }
  0x30   :  { %p666_p9 = pnand %p665_p8, %p659_p5 }
  0x32   :  { %669 = shalt.err (!%p666_p9)
}
  0x33   :  { %51 = dma.hbm_to_vmem [thread:$0]  %s850_s3, 8192, %s46_s18, [#allocation6], %s723_s11, %s723_s11, %s724_s12  }
  0x34   :  { %s727_s16 = smov [#allocation8]   ;;  %s670_s21 = scalar_lea.hbm %s852_s5, 4096 }
  0x35   :  { %s59_s17 = sshll.u32 %s727_s16, 4  ;;  %p671_p10 = scmp.ne.s32.totalorder %s852_s5, %s670_s21  ;;  %s60_s17 = int_to_ptr.vmem [resolvable:$true] %s59_s17 }
  0x36   :  { %p674_p11 = scmp.lt.u32.totalorder %s670_s21, %s852_s5 }
  0x38   :  { %p676_p12 = pnand %p674_p11, %p671_p10 }
  0x3a   :  { %679 = shalt.err (!%p676_p12)
}
  0x3b   :  { %s680_s1 = scalar_lea.vmem %s60_s17, 4096  ;;  %p685_p0 = scmp.lt.s32.totalorder %s60_s17, %s60_s17 }
  0x3c   :  { %p681_p13 = scmp.ne.s32.totalorder %s60_s17, %s680_s1  ;;  %p686_p1 = scmp.lt.s32.totalorder %s680_s1, %s680_s1 }
  0x3e   :  { %p687_p2 = por %p686_p1, %p685_p0 }
  0x40   :  { %p688_p3 = pnand %p687_p2, %p681_p13 }
  0x42   :  { %691 = shalt.err (!%p688_p3)
}
  0x43   :  { %s728_s3 = smov 128   ;;  %s729_s11 = smov 8  }
  0x44   :  { %65 = dma.hbm_to_vmem [thread:$0]  %s852_s5, 4096, %s60_s17, [#allocation9], %s728_s3, %s728_s3, %s729_s11  }
  0x45   :  { %714 = dma.done.wait [#allocation3], 128  }
  0x46   :  { %715 = vsyncadd [#allocation3], 4294967168 }
  0x47   :  { %716 = dma.done.wait [#allocation6], 8704  }
  0x48   :  { %717 = vsyncadd [#allocation6], 4294958592 }
  0x49   :  { %718 = dma.done.wait [#allocation9], 4096  }
  0x4a   :  { %719 = vsyncadd [#allocation9], 4294963200  ;;  %v730_v0 = vmov 0.0   ;;  %v82_v1 = vld [vmem:[#allocation5 + $0x8] sm:$0xff]  ;;  %v84_v2 = vld [vmem:[#allocation5 + $0x18] sm:$0xff]  ;;  %vm97_vm0 = vcmask 130048  }
  0x4b   :  { %165 = vmatprep.mubr.f32.mxu0 %v730_v0  ;;  %v81_v3 = vld [vmem:[#allocation5] sm:$0xff]  ;;  %v492_v4 = vpack.c.bf16 %v84_v2, %v82_v1  ;;  %v83_v5 = vld [vmem:[#allocation5 + $0x10] sm:$0xff]  ;;  %v175_v6 = vld [vmem:[#allocation7 + $0x8] sm:$0xff] }
  0x4c   :  { %v494_v7 = vpack.c.bf16 %v83_v5, %v81_v3  ;;  %v80_v8 = vld [vmem:[#allocation2] sm:$0xff]  ;;  %v174_v10 = vld [vmem:[#allocation7] sm:$0xff]  ;;  %v176_v11 = vld [vmem:[#allocation7 + $0x10] sm:$0xff] }
  0x4d   :  { %v177_v9 = vld [vmem:[#allocation7 + $0x18] sm:$0xff]  ;;  %493 = vmatprep.subr.bf16.mxu0 %v492_v4  ;;  %v498_v13 = vpack.c.bf16 %v176_v11, %v174_v10  ;;  %v179_v14 = vld [vmem:[#allocation7 + $0x28] sm:$0xff]  ;;  %v178_v16 = vld [vmem:[#allocation7 + $0x20] sm:$0xff] }
  0x4e   :  { %v496_v12 = vpack.c.bf16 %v177_v9, %v175_v6  ;;  %v181_v15 = vld [vmem:[#allocation7 + $0x38] sm:$0xff]  ;;  %495 = vmatpush1.bf16.msra.mxu0 %v494_v7  ;;  %v180_v18 = vld [vmem:[#allocation7 + $0x30] sm:$0xff]  ;;  %v183_v19 = vld [vmem:[#allocation7 + $0x48] sm:$0xff] }
  0x4f   :  { %v500_v17 = vpack.c.bf16 %v181_v15, %v179_v14  ;;  %v185_v20 = vld [vmem:[#allocation7 + $0x58] sm:$0xff]  ;;  %v502_v21 = vpack.c.bf16 %v180_v18, %v178_v16  ;;  %v182_v23 = vld [vmem:[#allocation7 + $0x40] sm:$0xff]  ;;  %v184_v24 = vld [vmem:[#allocation7 + $0x50] sm:$0xff] }
  0x50   :  { %497 = vmatprep.subr.bf16.mxu1 %v496_v12  ;;  %v504_v22 = vpack.c.bf16 %v185_v20, %v183_v19  ;;  %v187_v25 = vld [vmem:[#allocation7 + $0x68] sm:$0xff]  ;;  %v189_v26 = vld [vmem:[#allocation7 + $0x78] sm:$0xff]  ;;  %v506_v27 = vpack.c.bf16 %v184_v24, %v182_v23  ;;  %v186_v29 = vld [vmem:[#allocation7 + $0x60] sm:$0xff] }
  0x51   :  { %499 = vmatpush1.bf16.msra.mxu1 %v498_v13  ;;  %455 = vmatmul.mubr.msk.f32.vlgmr.msra.gmra.mrb[0].mxu0 %vm97_vm0, %v80_v8  ;;  %v508_v28 = vpack.c.bf16 %v189_v26, %v187_v25  ;;  %v188_v30 = vld [vmem:[#allocation7 + $0x70] sm:$0xff]  ;;  %v191_v31 = vld [vmem:[#allocation7 + $0x88] sm:$0xff]  ;;  %v193_v32 = vld [vmem:[#allocation7 + $0x98] sm:$0xff] }
  0x52   :  { %501 = vmatprep.subr.bf16.mxu1 %v500_v17  ;;  %v510_v33 = vpack.c.bf16 %v188_v30, %v186_v29  ;;  %v512_v34 = vpack.c.bf16 %v193_v32, %v191_v31  ;;  %v190_v35 = vld [vmem:[#allocation7 + $0x80] sm:$0xff]  ;;  %v192_v36 = vld [vmem:[#allocation7 + $0x90] sm:$0xff]  ;;  %v195_v37 = vld [vmem:[#allocation7 + $0xa8] sm:$0xff] }
  0x53   :  { %v197_v38 = vld [vmem:[#allocation7 + $0xb8] sm:$0xff]  ;;  %v514_v39 = vpack.c.bf16 %v192_v36, %v190_v35  ;;  %v194_v41 = vld [vmem:[#allocation7 + $0xa0] sm:$0xff]  ;;  %v196_v42 = vld [vmem:[#allocation7 + $0xb0] sm:$0xff] }
  0x54   :  { %v516_v40 = vpack.c.bf16 %v197_v38, %v195_v37  ;;  %v199_v43 = vld [vmem:[#allocation7 + $0xc8] sm:$0xff]  ;;  %v201_v44 = vld [vmem:[#allocation7 + $0xd8] sm:$0xff]  ;;  %v518_v45 = vpack.c.bf16 %v196_v42, %v194_v41  ;;  %v198_v47 = vld [vmem:[#allocation7 + $0xc0] sm:$0xff] }
  0x55   :  { %503 = vmatpush1.bf16.msra.mxu1 %v502_v21  ;;  %v520_v46 = vpack.c.bf16 %v201_v44, %v199_v43  ;;  %v200_v48 = vld [vmem:[#allocation7 + $0xd0] sm:$0xff]  ;;  %v203_v49 = vld [vmem:[#allocation7 + $0xe8] sm:$0xff]  ;;  %v205_v50 = vld [vmem:[#allocation7 + $0xf8] sm:$0xff] }
  0x56   :  { %505 = vmatprep.subr.bf16.mxu1 %v504_v22  ;;  %v522_v51 = vpack.c.bf16 %v200_v48, %v198_v47  ;;  %v524_v52 = vpack.c.bf16 %v205_v50, %v203_v49  ;;  %v202_v53 = vld [vmem:[#allocation7 + $0xe0] sm:$0xff]  ;;  %v204_v54 = vld [vmem:[#allocation7 + $0xf0] sm:$0xff]  ;;  %v207_v55 = vld [vmem:[#allocation7 + $0x108] sm:$0xff] }
  0x57   :  { %v209_v56 = vld [vmem:[#allocation7 + $0x118] sm:$0xff]  ;;  %v526_v57 = vpack.c.bf16 %v204_v54, %v202_v53  ;;  %v206_v59 = vld [vmem:[#allocation7 + $0x100] sm:$0xff]  ;;  %v208_v60 = vld [vmem:[#allocation7 + $0x110] sm:$0xff] }
  0x58   :  { %v528_v58 = vpack.c.bf16 %v209_v56, %v207_v55  ;;  %v211_v61 = vld [vmem:[#allocation7 + $0x128] sm:$0xff]  ;;  %v213_v62 = vld [vmem:[#allocation7 + $0x138] sm:$0xff]  ;;  %v530_v63 = vpack.c.bf16 %v208_v60, %v206_v59  ;;  %v210_v1 = vld [vmem:[#allocation7 + $0x120] sm:$0xff] }
  0x59   :  { %507 = vmatpush1.bf16.msra.mxu1 %v506_v27  ;;  %v532_v0 = vpack.c.bf16 %v213_v62, %v211_v61  ;;  %v212_v2 = vld [vmem:[#allocation7 + $0x130] sm:$0xff]  ;;  %v215_v3 = vld [vmem:[#allocation7 + $0x148] sm:$0xff]  ;;  %v217_v4 = vld [vmem:[#allocation7 + $0x158] sm:$0xff] }
  0x5a   :  { %509 = vmatprep.subr.bf16.mxu1 %v508_v28  ;;  %v534_v5 = vpack.c.bf16 %v212_v2, %v210_v1  ;;  %v536_v6 = vpack.c.bf16 %v217_v4, %v215_v3  ;;  %v214_v7 = vld [vmem:[#allocation7 + $0x140] sm:$0xff]  ;;  %v216_v8 = vld [vmem:[#allocation7 + $0x150] sm:$0xff]  ;;  %v219_v9 = vld [vmem:[#allocation7 + $0x168] sm:$0xff] }
  0x5b   :  { %v221_v10 = vld [vmem:[#allocation7 + $0x178] sm:$0xff]  ;;  %v538_v11 = vpack.c.bf16 %v216_v8, %v214_v7  ;;  %v218_v13 = vld [vmem:[#allocation7 + $0x160] sm:$0xff]  ;;  %v220_v14 = vld [vmem:[#allocation7 + $0x170] sm:$0xff] }
  0x5c   :  { %v540_v12 = vpack.c.bf16 %v221_v10, %v219_v9  ;;  %v223_v15 = vld [vmem:[#allocation7 + $0x188] sm:$0xff]  ;;  %v225_v16 = vld [vmem:[#allocation7 + $0x198] sm:$0xff]  ;;  %v542_v17 = vpack.c.bf16 %v220_v14, %v218_v13  ;;  %v222_v19 = vld [vmem:[#allocation7 + $0x180] sm:$0xff] }
  0x5d   :  { %511 = vmatpush1.bf16.msra.mxu1 %v510_v33  ;;  %v544_v18 = vpack.c.bf16 %v225_v16, %v223_v15  ;;  %v224_v20 = vld [vmem:[#allocation7 + $0x190] sm:$0xff]  ;;  %v227_v21 = vld [vmem:[#allocation7 + $0x1a8] sm:$0xff]  ;;  %v229_v22 = vld [vmem:[#allocation7 + $0x1b8] sm:$0xff] }
  0x5e   :  { %513 = vmatprep.subr.bf16.mxu1 %v512_v34  ;;  %v546_v23 = vpack.c.bf16 %v224_v20, %v222_v19  ;;  %v548_v24 = vpack.c.bf16 %v229_v22, %v227_v21  ;;  %v226_v25 = vld [vmem:[#allocation7 + $0x1a0] sm:$0xff]  ;;  %v228_v26 = vld [vmem:[#allocation7 + $0x1b0] sm:$0xff]  ;;  %v231_v27 = vld [vmem:[#allocation7 + $0x1c8] sm:$0xff] }
  0x5f   :  { %v233_v28 = vld [vmem:[#allocation7 + $0x1d8] sm:$0xff]  ;;  %v550_v29 = vpack.c.bf16 %v228_v26, %v226_v25  ;;  %v230_v31 = vld [vmem:[#allocation7 + $0x1c0] sm:$0xff]  ;;  %v232_v32 = vld [vmem:[#allocation7 + $0x1d0] sm:$0xff] }
  0x60   :  { %v552_v30 = vpack.c.bf16 %v233_v28, %v231_v27  ;;  %v554_v33 = vpack.c.bf16 %v232_v32, %v230_v31  ;;  %v235_v34 = vld [vmem:[#allocation7 + $0x1e8] sm:$0xff]  ;;  %v237_v35 = vld [vmem:[#allocation7 + $0x1f8] sm:$0xff]  ;;  %v234_v37 = vld [vmem:[#allocation7 + $0x1e0] sm:$0xff] }
  0x61   :  { %515 = vmatpush1.bf16.msra.mxu1 %v514_v39  ;;  %v556_v36 = vpack.c.bf16 %v237_v35, %v235_v34  ;;  %v236_v38 = vld [vmem:[#allocation7 + $0x1f0] sm:$0xff]  ;;  %v338_v41 = vld [vmem:[#allocation8 + $0x88] sm:$0xff]  ;;  %v321_v42 = vld [vmem:[#allocation8] sm:$0xff] }
  0x62   :  { %517 = vmatprep.subr.bf16.mxu1 %v516_v40  ;;  %v558_v39 = vpack.c.bf16 %v236_v38, %v234_v37  ;;  %v337_v40 = vld [vmem:[#allocation8 + $0x80] sm:$0xff]  ;;  %v322_v44 = vld [vmem:[#allocation8 + $0x8] sm:$0xff]  ;;  %v323_v49 = vld [vmem:[#allocation8 + $0x10] sm:$0xff] }
  0x63   :  { %v560_v43 = vpack.c.bf16 %v338_v41, %v337_v40  ;;  %v562_v47 = vpack.c.bf16 %v322_v44, %v321_v42  ;;  %v324_v50 = vld [vmem:[#allocation8 + $0x18] sm:$0xff]  ;;  %v325_v55 = vld [vmem:[#allocation8 + $0x20] sm:$0xff]  ;;  %v326_v56 = vld [vmem:[#allocation8 + $0x28] sm:$0xff] }
  0x64   :  { %v566_v53 = vpack.c.bf16 %v324_v50, %v323_v49  ;;  %v570_v59 = vpack.c.bf16 %v326_v56, %v325_v55  ;;  %v327_v61 = vld [vmem:[#allocation8 + $0x30] sm:$0xff]  ;;  %v328_v62 = vld [vmem:[#allocation8 + $0x38] sm:$0xff]  ;;  %v329_v3 = vld [vmem:[#allocation8 + $0x40] sm:$0xff] }
  0x65   :  { %519 = vmatpush1.bf16.msra.mxu1 %v518_v45  ;;  %v339_v45 = vld [vmem:[#allocation8 + $0x90] sm:$0xff]  ;;  %561 = vmatprep.subr.bf16.mxu0 %v560_v43  ;;  %v574_v1 = vpack.c.bf16 %v328_v62, %v327_v61  ;;  %v330_v4 = vld [vmem:[#allocation8 + $0x48] sm:$0xff]  ;;  %v332_v10 = vld [vmem:[#allocation8 + $0x58] sm:$0xff] }
  0x66   :  { %521 = vmatprep.subr.bf16.mxu1 %v520_v46  ;;  %v340_v46 = vld [vmem:[#allocation8 + $0x98] sm:$0xff]  ;;  %563 = vmatpush3.bf16.msra.mxu0 %v562_v47  ;;  %v578_v7 = vpack.c.bf16 %v330_v4, %v329_v3  ;;  %v331_v9 = vld [vmem:[#allocation8 + $0x50] sm:$0xff]  ;;  %v333_v15 = vld [vmem:[#allocation8 + $0x60] sm:$0xff] }
  0x67   :  { %v564_v48 = vpack.c.bf16 %v340_v46, %v339_v45  ;;  %v582_v13 = vpack.c.bf16 %v332_v10, %v331_v9  ;;  %v334_v16 = vld [vmem:[#allocation8 + $0x68] sm:$0xff]  ;;  %v85_v21 = vld [vmem:[%s849_s2] sm:$0x3]  ;;  %v351_v31 = vld [vmem:[#allocation8 + $0xf0] sm:$0xff] }
  0x68   :  { %v352_v32 = vld [vmem:[#allocation8 + $0xf8] sm:$0xff]  ;;  %v335_v34 = vld [vmem:[#allocation8 + $0x70] sm:$0xff] }
  0x69   :  { %523 = vmatpush1.bf16.msra.mxu1 %v522_v51  ;;  %v341_v51 = vld [vmem:[#allocation8 + $0xa0] sm:$0xff]  ;;  %565 = vmatprep.subr.bf16.mxu0 %v564_v48  ;;  %v336_v35 = vld [vmem:[#allocation8 + $0x78] sm:$0xff] }
  0x6a   :  { %525 = vmatprep.subr.bf16.mxu1 %v524_v52  ;;  %v342_v52 = vld [vmem:[#allocation8 + $0xa8] sm:$0xff]  ;;  %567 = vmatpush3.bf16.msra.mxu0 %v566_v53  ;;  %v238_v37 = vld [vmem:[%s851_s4] sm:$0x3]  ;;  %s731_s4 = smov [#allocation10]  }
  0x6b   :  { %v568_v54 = vpack.c.bf16 %v342_v52, %v341_v51  ;;  %v456_v45 = vld [vmem:[%s853_s6] ss:$0 sm:$0xff]  ;;  %s444_s30 = sshll.u32 %s731_s4, 4  ;;  %s445_s30 = int_to_ptr.vmem [resolvable:$true] %s444_s30 }
  0x6c   :  { %s692_s8 = scalar_lea.vmem %s445_s30, 128  ;;  %p697_p5 = scmp.lt.s32.totalorder %s445_s30, %s445_s30 }
  0x6d   :  { %527 = vmatpush1.bf16.msra.mxu1 %v526_v57  ;;  %v343_v57 = vld [vmem:[#allocation8 + $0xb0] sm:$0xff]  ;;  %569 = vmatprep.subr.bf16.mxu0 %v568_v54  ;;  %p693_p4 = scmp.ne.s32.totalorder %s445_s30, %s692_s8  ;;  %p698_p6 = scmp.lt.s32.totalorder %s692_s8, %s692_s8 }
  0x6e   :  { %529 = vmatprep.subr.bf16.mxu1 %v528_v58  ;;  %v344_v58 = vld [vmem:[#allocation8 + $0xb8] sm:$0xff]  ;;  %571 = vmatpush3.bf16.msra.mxu0 %v570_v59 }
  0x6f   :  { %v572_v60 = vpack.c.bf16 %v344_v58, %v343_v57  ;;  %p699_p7 = por %p698_p6, %p697_p5 }
  0x71   :  { %531 = vmatpush1.bf16.msra.mxu1 %v530_v63  ;;  %v345_v63 = vld [vmem:[#allocation8 + $0xc0] sm:$0xff]  ;;  %573 = vmatprep.subr.bf16.mxu0 %v572_v60  ;;  %p700_p8 = pnand %p699_p7, %p693_p4 }
  0x72   :  { %533 = vmatprep.subr.bf16.mxu1 %v532_v0  ;;  %v346_v0 = vld [vmem:[#allocation8 + $0xc8] sm:$0xff]  ;;  %575 = vmatpush3.bf16.msra.mxu0 %v574_v1 }
  0x73   :  { %v576_v2 = vpack.c.bf16 %v346_v0, %v345_v63 }
  0x75   :  { %535 = vmatpush1.bf16.msra.mxu1 %v534_v5  ;;  %v347_v5 = vld [vmem:[#allocation8 + $0xd0] sm:$0xff]  ;;  %577 = vmatprep.subr.bf16.mxu0 %v576_v2 }
  0x76   :  { %537 = vmatprep.subr.bf16.mxu1 %v536_v6  ;;  %v348_v6 = vld [vmem:[#allocation8 + $0xd8] sm:$0xff]  ;;  %579 = vmatpush3.bf16.msra.mxu0 %v578_v7 }
  0x77   :  { %v580_v8 = vpack.c.bf16 %v348_v6, %v347_v5 }
  0x79   :  { %539 = vmatpush1.bf16.msra.mxu1 %v538_v11  ;;  %v349_v11 = vld [vmem:[#allocation8 + $0xe0] sm:$0xff]  ;;  %581 = vmatprep.subr.bf16.mxu0 %v580_v8 }
  0x7a   :  { %541 = vmatprep.subr.bf16.mxu1 %v540_v12  ;;  %v350_v12 = vld [vmem:[#allocation8 + $0xe8] sm:$0xff]  ;;  %583 = vmatpush3.bf16.msra.mxu0 %v582_v13 }
  0x7b   :  { %v584_v14 = vpack.c.bf16 %v350_v12, %v349_v11 }
  0x7d   :  { %543 = vmatpush1.bf16.msra.mxu1 %v542_v17  ;;  %v586_v17 = vpack.c.bf16 %v334_v16, %v333_v15  ;;  %585 = vmatprep.subr.bf16.mxu0 %v584_v14 }
  0x7e   :  { %545 = vmatprep.subr.bf16.mxu1 %v544_v18  ;;  %v87_v18 = vlaneseq }
  0x7f   :  { %587 = vmatpush3.bf16.msra.mxu0 %v586_v17 }
  0x80   :  { %v88_v19 = vshrl.u32 %v87_v18, 7  ;;  %v431_v49 = vand.u32 127, %v87_v18 }
  0x81   :  { %547 = vmatpush1.bf16.msra.mxu1 %v546_v23 }
  0x82   :  { %549 = vmatprep.subr.bf16.mxu1 %v548_v24  ;;  %v89_v20 = vsub.s32 0, %v88_v19  ;;  %v93_v22 = vsub.s32 1, %v88_v19  ;;  %vm435_vm1 = vcmp.lt.s32.totalorder %v431_v49, 64 }
  0x84   :  { %v90_v23 = vrot.slane %v85_v21, %v89_v20  ;;  %v94_v24 = vrot.slane %v85_v21, %v93_v22  ;;  %v247_v38 = vrot.slane %v238_v37, %v93_v22 }
  0x85   :  { %551 = vmatpush1.bf16.msra.mxu1 %v550_v29 }
  0x86   :  { %553 = vmatprep.subr.bf16.mxu1 %v552_v30 }
  0x89   :  { %555 = vmatpush1.bf16.msra.mxu1 %v554_v33  ;;  %v588_v33 = vpack.c.bf16 %v352_v32, %v351_v31 }
  0x8a   :  { %557 = vmatprep.subr.bf16.mxu1 %v556_v36  ;;  %v590_v36 = vpack.c.bf16 %v336_v35, %v335_v34 }
  0x8b   :  { %589 = vmatprep.subr.bf16.mxu0 %v588_v33 }
  0x8c   :  { %591 = vmatpush3.bf16.msra.mxu0 %v590_v36 }
  0x8d   :  { %559 = vmatpush1.bf16.msra.mxu1 %v558_v39  ;;  %v243_v39 = vrot.slane %v238_v37, %v89_v20 }
 0x124   :  { %v167_v25 = vpop.f32.mrb[0].mxu0 }
 0x125   :  { %v168_v26 = vadd.f32 %v167_v25, %v90_v23  ;;  %v169_v27 = vpop.f32.mrb[1].mxu0 }
 0x126   :  { %v170_v28 = vadd.f32 %v169_v27, %v94_v24 }
 0x127   :  { %v172_v30 = vmax.f32 %v168_v26, 0.0 }
 0x128   :  { %v173_v29 = vmax.f32 %v170_v28, 0.0 }
 0x12a   :  { %314 = vmatprep.mubr.f32.mxu1 %v173_v29 }
 0x12b   :  { %315 = vmatmul.mubr.f32.vlgmr.msra.gmra.mrb[0].mxu1 %v172_v30 }
 0x1fe   :  { %v316_v40 = vpop.f32.mrb[0].mxu1 }
 0x1ff   :  { %v318_v41 = vpop.f32.mrb[1].mxu1  ;;  %v317_v43 = vadd.f32 %v316_v40, %v243_v39 }
 0x200   :  { %v319_v42 = vadd.f32 %v318_v41, %v247_v38 }
 0x202   :  { %424 = vmatprep.mubr.f32.mxu0 %v319_v42 }
 0x203   :  { %425 = vmatmul.mubr.f32.vlgmr.msra.gmra.mrb[2].mxu0 %v317_v43 }
 0x2d6   :  { %v489_v44 = vpop.f32.mrb[2].mxu0 }
 0x2d7   :  { %v490_v46 = vpop.f32.mrb[3].mxu0 }
 0x2d8   :  { %v491_v47 = vadd.f32 %v490_v46, %v489_v44 }
 0x2da   :  { %v427_v48 = vadd.f32 %v491_v47, %v456_v45 }
 0x2dc   :  { %602 = vtanh.f32 %v427_v48 }
 0x2e6   :  { %v603_v50 = vpop.eup %602 }
 0x2e7   :  { %v433_v51 = vmul.f32 3.5, %v603_v50 }
 0x2e9   :  { %v434_v52 = vadd.f32 -1.5, %v433_v51 }
 0x2eb   :  { %v436_v53 = vsel %vm435_vm1, %v427_v48, %v434_v52 }
 0x2ec   :  { %437 = vst [vmem:[#allocation10] sm:$0xff] %v436_v53 }
 0x2ed   :  { %703 = shalt.err (!%p700_p8)
}
 0x2ee   :  { %s704_s10 = scalar_lea.hbm %s854_s7, 128 }
 0x2ef   :  { %p705_p9 = scmp.ne.s32.totalorder %s854_s7, %s704_s10  ;;  %p708_p10 = scmp.lt.u32.totalorder %s704_s10, %s854_s7 }
 0x2f1   :  { %p710_p11 = pnand %p708_p10, %p705_p9 }
 0x2f3   :  { %713 = shalt.err (!%p710_p11)
}
 0x2f4   :  { %447 = dma.vmem_to_hbm [thread:$0]  %s445_s30, 128, %s854_s7, [#allocation4]  }
 0x2f5   :  { %720 = dma.done.wait [#allocation4], 128  }
 0x2f6   :  { %721 = vsyncadd [#allocation4], 4294967168 }
 0x2f7   :  { %451 = vsyncpa [#allocation3], 1 }
 0x2f8   :  { %452 = vsyncpa [#allocation6], 1 }
 0x2f9   :  { %453 = vsyncpa [#allocation9], 1 }
 0x2fa   :  { %454 = vsyncpa [#allocation4], 1 }

</bundles_post_ra>
